<compile_context>
chip_gen: v5e
topology: v5e:2x2
jax: 0.10.0
libtpu: 0.0.40
codegen_flags: <defaults>
</compile_context>

<pallas_src>
import functools

import jax
import jax.numpy as jnp
from jax.experimental import pallas as pl
from jax.experimental.pallas import tpu as pltpu


def _round_up(v, m):
    return ((v + m - 1) // m) * m


def _focal_loss_kernel(x_ref, t_ref, out_ref, *, alpha, gamma, n_batch, hw,
                       batch_tile, pixel_tile, need_pix_mask, need_batch_mask):
    # x_ref : (batch_tile, C, pixel_tile) logits, classes on sublanes, pixels on lanes.
    # t_ref : (batch_tile, 1, pixel_tile) int32 class index per pixel.
    # out_ref: (1, 1) f32 per-block partial loss sum (SMEM).
    x = x_ref[...].astype(jnp.float32)          # upcast bf16 once; all math in f32
    t = t_ref[...]                              # (B, 1, T)

    # numerically stable log-sum-exp over the class (sublane) axis
    m = jnp.max(x, axis=1, keepdims=True)                             # (B,1,T)
    lse = jnp.log(jnp.sum(jnp.exp(x - m), axis=1, keepdims=True))     # (B,1,T)

    # gather the true-class logit via masked sublane reduce, then form log_p_t
    # directly from the raw logits — no (C,T) log_softmax intermediate.
    # NOTE: out-of-range targets (e.g. an ignore_index) yield x_t = 0 here
    # instead of the reference's undefined OOB gather.
    cls = jax.lax.broadcasted_iota(jnp.int32, x.shape, 1)             # (B,C,T)
    x_t = jnp.sum(jnp.where(cls == t, x, 0.0), axis=1, keepdims=True)  # (B,1,T)
    log_p_t = x_t - m - lse
    p_t = jnp.exp(log_p_t)                                            # EUP, cheap

    w = 1.0 - p_t
    if float(gamma) == int(gamma) and int(gamma) >= 0:
        # integer-gamma fast path: unrolled multiply chain (VPU only, NaN-safe)
        focal_weight = jnp.ones_like(w)
        for _ in range(int(gamma)):
            focal_weight = focal_weight * w
    else:
        focal_weight = jnp.maximum(w, 0.0) ** gamma

    loss = focal_weight * (-log_p_t)
    if alpha is not None:
        loss = alpha * loss

    # Neutralize undefined data of partial trailing blocks with *selects*
    # (garbage / NaN in masked lanes is safely discarded), applied before the sum.
    if need_pix_mask:
        pix = (pl.program_id(1) * pixel_tile
               + jax.lax.broadcasted_iota(jnp.int32, loss.shape, 2))
        loss = jnp.where(pix < hw, loss, 0.0)
    if need_batch_mask:
        row = (pl.program_id(0) * batch_tile
               + jax.lax.broadcasted_iota(jnp.int32, loss.shape, 0))
        loss = jnp.where(row < n_batch, loss, 0.0)

    out_ref[0, 0] = jnp.sum(loss)               # scalar partial sum -> SMEM


def focal_loss_with_logits(x_nchw, target_nhw, *, alpha=0.25, gamma=2.0,
                           reduction="mean", max_pixel_tile=None):
    """Focal loss matching the PyTorch FocalLossWithLogits forward.

    x_nchw: (N, C, H, W) float logits (f32 or bf16 — bf16 halves HBM traffic of
    this memory-bound kernel; accumulation is f32 either way).
    target_nhw: (N, H, W) integer class index per pixel.
    """
    n, c, h, w = x_nchw.shape
    hw = h * w

    # Free reshapes (NCHW is contiguous): no transpose, no pad — pixels on lanes.
    x3d = x_nchw.reshape(n, c, hw)
    t3d = target_nhw.reshape(n, 1, hw).astype(jnp.int32)

    # ---- generation-aware per-step VMEM budget -----------------------------
    try:
        vmem_cap = int(pltpu.get_tpu_info().vmem_capacity_bytes)
    except Exception:
        vmem_cap = 64 << 20                     # conservative (v7x-sized) fallback
    step_budget = min(vmem_cap // 3, 48 << 20)  # ~21 MiB on v7x, ~42 MiB on v5e/v6e

    # bytes per pixel column (per batch row) in one grid step:
    #   2 pipeline buffers of both inputs + ~5 f32 (C,T) intermediates + small (1,T) temps
    c_sub = _round_up(c, 8)                     # sublane padding of f32 tiles
    x_itemsize = jnp.dtype(x_nchw.dtype).itemsize
    bytes_per_px = (2 * (c_sub * x_itemsize + 4)   # double-buffered logits + targets
                    + 5 * c_sub * 4                # f32 (C,T) intermediates
                    + 8 * 4)                       # (1,T) f32 temps

    budget_px = max(128, step_budget // bytes_per_px)
    if max_pixel_tile is not None:              # test/tuning override
        budget_px = min(budget_px, max_pixel_tile)

    if hw <= budget_px:
        # Whole image per step (full-dim block — always layout-legal, no pixel
        # mask).  Spend leftover budget on batch-axis blocking so small images
        # still move large contiguous slabs per grid step.
        pixel_tile = hw
        num_pix_tiles = 1
        row_px = _round_up(hw, 128)             # lane-padded pixels per batch row
        batch_tile = max(1, min(n, budget_px // row_px))
    else:
        pixel_tile = max(128, (budget_px // 128) * 128)   # lane-aligned tile
        num_pix_tiles = pl.cdiv(hw, pixel_tile)
        batch_tile = 1
    num_batch_tiles = pl.cdiv(n, batch_tile)

    need_pix_mask = (num_pix_tiles * pixel_tile != hw)
    need_batch_mask = (num_batch_tiles * batch_tile != n)

    # Explicit VMEM budget: actual per-step working set + slack, capped below
    # the physical capacity of the current generation.
    used = batch_tile * _round_up(pixel_tile, 128) * bytes_per_px
    vmem_limit = int(min(max(used + (8 << 20), 32 << 20),
                         max(vmem_cap - (8 << 20), 32 << 20)))

    kernel = functools.partial(
        _focal_loss_kernel, alpha=alpha, gamma=gamma, n_batch=n, hw=hw,
        batch_tile=batch_tile, pixel_tile=pixel_tile,
        need_pix_mask=need_pix_mask, need_batch_mask=need_batch_mask)

    partial_sums = pl.pallas_call(
        kernel,
        out_shape=jax.ShapeDtypeStruct((num_batch_tiles, num_pix_tiles),
                                       jnp.float32),
        grid_spec=pltpu.PrefetchScalarGridSpec(
            num_scalar_prefetch=0,
            grid=(num_batch_tiles, num_pix_tiles),
            in_specs=[
                pl.BlockSpec((batch_tile, c, pixel_tile),
                             lambda b, t: (b, 0, t)),
                pl.BlockSpec((batch_tile, 1, pixel_tile),
                             lambda b, t: (b, 0, t)),
            ],
            # Scalar partial sums live in SMEM: no padded (8,128) masked store
            # per grid step.
            out_specs=pl.BlockSpec((1, 1), lambda b, t: (b, t),
                                   memory_space=pltpu.MemorySpace.SMEM),
        ),
        # Both axes independent -> eligible for megacore sharding on v7x.
        # (If xprof shows one v7x TensorCore idle, switch the tile axis to
        #  pltpu.CORE_PARALLEL.)
        compiler_params=pltpu.CompilerParams(
            dimension_semantics=("parallel", "parallel"),
            vmem_limit_bytes=vmem_limit),
    )(x3d, t3d)

    total = jnp.sum(partial_sums)               # tiny final reduce in the wrapper
    if reduction == "mean":
        return total / jnp.float32(n * hw)
    elif reduction == "sum":
        return total
    # TODO(synk): 'none' reduction (per-pixel (N,1,H,W) loss output) not implemented.
    raise NotImplementedError("reduction must be 'mean' or 'sum'")


def _reference(x_nchw, target_nhw, alpha=0.25, gamma=2.0):
    # pure-JAX reference mirroring the PyTorch module
    x = x_nchw.astype(jnp.float32)
    sm = jax.nn.softmax(x, axis=1)
    lsm = jax.nn.log_softmax(x, axis=1)
    t = target_nhw[:, None, :, :]
    p_t = jnp.take_along_axis(sm, t, axis=1)
    log_p_t = jnp.take_along_axis(lsm, t, axis=1)
    fw = (1.0 - p_t) ** gamma
    loss = -alpha * fw * log_p_t if alpha is not None else -fw * log_p_t
    return loss.mean()


if __name__ == "__main__":
    key = jax.random.PRNGKey(0)
    k1, k2, k3, k4 = jax.random.split(key, 4)

    # 1) base smoke test: (2, 4, 16, 16), single grid step (batch-blocked)
    N, C, H, W = 2, 4, 16, 16
    x = jax.random.normal(k1, (N, C, H, W), dtype=jnp.float32)
    target = jax.random.randint(k2, (N, H, W), 0, C, dtype=jnp.int32)
    out = jax.block_until_ready(
        focal_loss_with_logits(x, target, alpha=0.25, gamma=2.0))
    ref = _reference(x, target, alpha=0.25, gamma=2.0)
    assert jnp.allclose(out, ref, atol=1e-5, rtol=1e-5), (out, ref)

    # 2) odd spatial size, multiple pixel tiles -> exercises the tail pixel mask
    N2, C2, H2, W2 = 3, 5, 13, 11
    x2 = jax.random.normal(k3, (N2, C2, H2, W2), dtype=jnp.float32)
    t2 = jax.random.randint(k4, (N2, H2, W2), 0, C2, dtype=jnp.int32)
    ref2 = _reference(x2, t2, alpha=0.25, gamma=2.0)
    out2 = jax.block_until_ready(
        focal_loss_with_logits(x2, t2, alpha=0.25, gamma=2.0, max_pixel_tile=128))
    assert jnp.allclose(out2, ref2, atol=1e-5, rtol=1e-5), (out2, ref2)

    # 3) batch-tiled path with a partial trailing batch block -> batch mask
    out3 = jax.block_until_ready(
        focal_loss_with_logits(x2, t2, alpha=0.25, gamma=2.0, max_pixel_tile=512))
    assert jnp.allclose(out3, ref2, atol=1e-5, rtol=1e-5), (out3, ref2)

    print("KERNEL_OK")
</pallas_src>

<mosaic_0001>
module attributes {stable_mosaic.version = 11 : i64} {
  func.func @_focal_loss_kernel(%arg0: i32, %arg1: i32, %arg2: memref<2x4x256xf32, #tpu.memory_space<vmem>>, %arg3: memref<2x1x256xi32, #tpu.memory_space<vmem>>, %arg4: memref<1x1xf32, #tpu.memory_space<smem>>) attributes {dimension_semantics = [#tpu.dimension_semantics<parallel>, #tpu.dimension_semantics<parallel>], iteration_bounds = array<i64: 1, 1>, scalar_prefetch = 0 : i64, scratch_operands = 0 : i64, tpu.core_type = #tpu.core_type<tc>, window_params = [{transform_indices = @transform_0, window_bounds = array<i64: 2, 4, 256>}, {transform_indices = @transform_1, window_bounds = array<i64: 2, 1, 256>}, {transform_indices = @transform_2, window_bounds = array<i64: 1, 1>}]} {
    %c0 = arith.constant 0 : index
    %c0_0 = arith.constant 0 : index
    %c0_1 = arith.constant 0 : index
    %0 = vector.load %arg2[%c0, %c0_0, %c0_1] : memref<2x4x256xf32, #tpu.memory_space<vmem>>, vector<2x4x256xf32>
    %c0_2 = arith.constant 0 : index
    %c0_3 = arith.constant 0 : index
    %c0_4 = arith.constant 0 : index
    %1 = vector.load %arg3[%c0_2, %c0_3, %c0_4] : memref<2x1x256xi32, #tpu.memory_space<vmem>>, vector<2x1x256xi32>
    %cst = arith.constant dense<0xFF800000> : vector<2x256xf32>
    %2 = vector.multi_reduction <maximumf>, %0, %cst [1] : vector<2x4x256xf32> to vector<2x256xf32>
    %3 = vector.shape_cast %2 : vector<2x256xf32> to vector<2x1x256xf32>
    %4 = vector.broadcast %3 : vector<2x1x256xf32> to vector<2x4x256xf32>
    %5 = arith.subf %0, %4 : vector<2x4x256xf32>
    %6 = math.exp %5 : vector<2x4x256xf32>
    %cst_5 = arith.constant dense<0.000000e+00> : vector<2x256xf32>
    %7 = vector.multi_reduction <add>, %6, %cst_5 [1] : vector<2x4x256xf32> to vector<2x256xf32>
    %8 = vector.shape_cast %7 : vector<2x256xf32> to vector<2x1x256xf32>
    %9 = math.log %8 : vector<2x1x256xf32>
    %10 = tpu.iota {dimensions = array<i32: 1>} : vector<2x4x256xi32>
    %11 = vector.broadcast %1 : vector<2x1x256xi32> to vector<2x4x256xi32>
    %12 = arith.cmpi eq, %10, %11 : vector<2x4x256xi32>
    %cst_6 = arith.constant 0.000000e+00 : f32
    %13 = vector.broadcast %cst_6 : f32 to vector<2x4x256xf32>
    %14 = arith.select %12, %0, %13 : vector<2x4x256xi1>, vector<2x4x256xf32>
    %cst_7 = arith.constant dense<0.000000e+00> : vector<2x256xf32>
    %15 = vector.multi_reduction <add>, %14, %cst_7 [1] : vector<2x4x256xf32> to vector<2x256xf32>
    %16 = vector.shape_cast %15 : vector<2x256xf32> to vector<2x1x256xf32>
    %17 = arith.subf %16, %3 : vector<2x1x256xf32>
    %18 = arith.subf %17, %9 : vector<2x1x256xf32>
    %19 = math.exp %18 : vector<2x1x256xf32>
    %cst_8 = arith.constant 1.000000e+00 : f32
    %20 = vector.broadcast %cst_8 : f32 to vector<2x1x256xf32>
    %21 = arith.subf %20, %19 : vector<2x1x256xf32>
    %cst_9 = arith.constant 1.000000e+00 : f32
    %22 = vector.broadcast %cst_9 : f32 to vector<2x1x256xf32>
    %23 = arith.mulf %22, %21 : vector<2x1x256xf32>
    %24 = arith.mulf %23, %21 : vector<2x1x256xf32>
    %cst_10 = arith.constant 0.000000e+00 : f32
    %25 = vector.broadcast %cst_10 : f32 to vector<2x1x256xf32>
    %26 = arith.subf %25, %18 : vector<2x1x256xf32>
    %27 = arith.mulf %24, %26 : vector<2x1x256xf32>
    %cst_11 = arith.constant 2.500000e-01 : f32
    %28 = vector.broadcast %cst_11 : f32 to vector<2x1x256xf32>
    %29 = arith.mulf %28, %27 : vector<2x1x256xf32>
    %30 = vector.shape_cast %29 : vector<2x1x256xf32> to vector<1x2x1x256xf32>
    %cst_12 = arith.constant dense<0.000000e+00> : vector<1xf32>
    %31 = vector.multi_reduction <add>, %30, %cst_12 [1, 2, 3] : vector<1x2x1x256xf32> to vector<1xf32>
    %32 = vector.shape_cast %31 : vector<1xf32> to vector<1x1x1x1xf32>
    %33 = vector.extract %32[0, 0, 0, 0] : f32 from vector<1x1x1x1xf32>
    %c0_13 = arith.constant 0 : index
    %c0_14 = arith.constant 0 : index
    %34 = memref.load %arg4[%c0_13, %c0_14] : memref<1x1xf32, #tpu.memory_space<smem>>
    memref.store %33, %arg4[%c0_13, %c0_14] : memref<1x1xf32, #tpu.memory_space<smem>>
    return
  }
  func.func @transform_0(%arg0: i32, %arg1: i32) -> (i32, i32, i32) {
    %c0_i32 = arith.constant 0 : i32
    %c0_i32_0 = arith.constant 0 : i32
    return %arg0, %c0_i32, %arg1 : i32, i32, i32
  }
  func.func @transform_1(%arg0: i32, %arg1: i32) -> (i32, i32, i32) {
    %c0_i32 = arith.constant 0 : i32
    %c0_i32_0 = arith.constant 0 : i32
    return %arg0, %c0_i32, %arg1 : i32, i32, i32
  }
  func.func @transform_2(%arg0: i32, %arg1: i32) -> (i32, i32) {
    %c0_i32 = arith.constant 0 : i32
    return %arg0, %arg1 : i32, i32
  }
}

</mosaic_0001>

<bundles_post_ra>
// kernel: tpu_custom_call.1
= control target key start
LH: loop header
LB: loop body
LE: loop exit
PB: predicated region body
PF: predicated region fallthrough
CT: control target
= control target key end

     0   :  { %7 = vsyncpa [#allocation3], 0  ;;  %s470_s0 = inlined_call_operand.hbm [shape: f32[2,4,256], index: 0, kind: input, shape index: {}]   ;;  %s471_s1 = inlined_call_operand.hbm [shape: s32[2,1,256], index: 1, kind: input, shape index: {}]   ;;  %s472_s2 = inlined_call_operand.hbm [shape: f32[1,1], index: 2, kind: output, shape index: {}]  }
   0x1   :  { %8 = vsyncpa [#allocation6], 0 }
   0x2   :  { %9 = vsyncpa [#allocation4], 0  ;;  %s14_s11 = sshll.u32 %s470_s0, 4  ;;  %s375_s12 = smov [#allocation2]   ;;  %s15_s11 = int_to_ptr.hbm [resolvable:$true] %s14_s11 }
   0x3   :  { %s16_s13 = sshll.u32 %s375_s12, 4  ;;  %s27_s16 = sshll.u32 %s471_s1, 4  ;;  %s17_s13 = int_to_ptr.vmem [resolvable:$true] %s16_s13  ;;  %s28_s16 = int_to_ptr.hbm [resolvable:$true] %s27_s16 }
   0x4   :  { %s376_s17 = smov 128   ;;  %s377_s18 = smov 8  }
   0x5   :  { %22 = dma.hbm_to_vmem [thread:$0]  %s15_s11, 256, %s17_s13, [#allocation3], %s376_s17, %s376_s17, %s377_s18  }
   0x6   :  { %s378_s19 = smov [#allocation5]   ;;  %s379_s21 = smov 32  }
   0x7   :  { %s29_s20 = sshll.u32 %s378_s19, 4  ;;  %s380_s22 = smov 2   ;;  %s30_s20 = int_to_ptr.vmem [resolvable:$true] %s29_s20 }
   0x8   :  { %35 = dma.hbm_to_vmem [thread:$0]  %s28_s16, 64, %s30_s20, [#allocation6], %s379_s21, %s379_s21, %s380_s22  }
   0x9   :  { %369 = dma.done.wait [#allocation3], 256  }
   0xa   :  { %370 = vsyncadd [#allocation3], 4294967040 }
   0xb   :  { %371 = dma.done.wait [#allocation6], 64  }
   0xc   :  { %372 = vsyncadd [#allocation6], 4294967232  ;;  %v403_v0 = vld [vmem:[#allocation2] sm:$0xff]  ;;  %v405_v1 = vld [vmem:[#allocation2 + $0x8] sm:$0xff]  ;;  %vm61_vm0 = vcmask 1043456   ;;  %v155_v44 = vlaneseq  ;;  %vm244_vm5 = vcmask 1040384  }
   0xd   :  { %50 = vst [vmem:[#allocation1] ss:$2 sm:$0xff] %v403_v0  ;;  %v46_v45 = vld [vmem:[#allocation5] sm:$0x3]  ;;  %v47_v46 = vld [vmem:[#allocation5 + $0x2] sm:$0x3] }
   0xe   :  { %54 = vst [vmem:[#allocation1 + $0x10] ss:$2 sm:$0xff] %v405_v1  ;;  %v156_v47 = vshrl.u32 %v155_v44, 7  ;;  %v157_v60 = vperm.slane %v46_v45, 0  ;;  %v158_v61 = vperm.slane %v46_v45, 1  ;;  %v159_v62 = vperm.slane %v47_v46, 0 }
   0xf   :  { %v160_v63 = vperm.slane %v47_v46, 1  ;;  %s268_s23 = sshll.u32 %s472_s2, 4  ;;  %s381_s25 = smov [#allocation7]   ;;  %s269_s23 = int_to_ptr.hbm [resolvable:$true] %s268_s23 }
  0x10   :  { %vm435_vm1 = vcmp.eq.s32.totalorder %v156_v47, %v157_v60  ;;  %vm439_vm2 = vcmp.eq.s32.totalorder %v156_v47, %v158_v61  ;;  %vm443_vm3 = vcmp.eq.s32.totalorder %v156_v47, %v159_v62 }
  0x11   :  { %vm447_vm4 = vcmp.eq.s32.totalorder %v156_v47, %v160_v63 }
  0x14   :  { %v51_v2 = vld.sshfl [vmem:[#allocation1] sm:$0xff pattern:$0x75316420]  ;;  %v52_v3 = vld.sshfl [vmem:[#allocation1 + $0x8] sm:$0xff pattern:$0x75316420] }
  0x15   :  { %v55_v4 = vld.sshfl [vmem:[#allocation1 + $0x10] sm:$0xff pattern:$0x75316420]  ;;  %v56_v5 = vld.sshfl [vmem:[#allocation1 + $0x18] sm:$0xff pattern:$0x75316420] }
  0x16   :  { %v62_v6 = vsel %vm61_vm0, %v51_v2, -inf  ;;  %v69_v7 = vsel %vm61_vm0, %v52_v3, -inf  ;;  %v76_v8 = vsel %vm61_vm0, %v55_v4, -inf  ;;  %v83_v9 = vsel %vm61_vm0, %v56_v5, -inf }
  0x17   :  { %v63_v10 = vrot.slane %v62_v6, 4  ;;  %v70_v11 = vrot.slane %v69_v7, 4  ;;  %v77_v12 = vrot.slane %v76_v8, 4  ;;  %v84_v13 = vrot.slane %v83_v9, 4 }
  0x19   :  { %v64_v14 = vmax.f32 %v62_v6, %v63_v10  ;;  %v71_v15 = vmax.f32 %v69_v7, %v70_v11  ;;  %v78_v16 = vmax.f32 %v76_v8, %v77_v12  ;;  %v85_v17 = vmax.f32 %v83_v9, %v84_v13 }
  0x1b   :  { %v65_v18 = vrot.slane %v64_v14, 2  ;;  %v72_v19 = vrot.slane %v71_v15, 2  ;;  %v79_v20 = vrot.slane %v78_v16, 2  ;;  %v86_v21 = vrot.slane %v85_v17, 2 }
  0x1d   :  { %v66_v22 = vmax.f32 %v64_v14, %v65_v18  ;;  %v73_v23 = vmax.f32 %v71_v15, %v72_v19  ;;  %v80_v24 = vmax.f32 %v78_v16, %v79_v20  ;;  %v87_v25 = vmax.f32 %v85_v17, %v86_v21 }
  0x1f   :  { %v67_v26 = vrot.slane %v66_v22, 1  ;;  %v74_v27 = vrot.slane %v73_v23, 1  ;;  %v81_v28 = vrot.slane %v80_v24, 1  ;;  %v88_v29 = vrot.slane %v87_v25, 1 }
  0x21   :  { %v413_v30 = vmax.f32 %v66_v22, %v67_v26  ;;  %v415_v31 = vmax.f32 %v73_v23, %v74_v27  ;;  %v417_v32 = vmax.f32 %v80_v24, %v81_v28  ;;  %v419_v33 = vmax.f32 %v87_v25, %v88_v29 }
  0x23   :  { %v94_v34 = vrot.slane %v415_v31, 4  ;;  %v95_v35 = vrot.slane %v419_v33, 4 }
  0x25   :  { %v96_v36 = vsel %vm61_vm0, %v413_v30, %v94_v34  ;;  %v97_v37 = vsel %vm61_vm0, %v417_v32, %v95_v35 }
  0x26   :  { %v100_v38 = vsub.f32 %v403_v0, %v96_v36  ;;  %v101_v39 = vsub.f32 %v405_v1, %v97_v37 }
  0x28   :  { %v102_v40 = vmul.f32 1.442695, %v100_v38  ;;  %v104_v41 = vmul.f32 1.442695, %v101_v39 }
  0x2a   :  { %289 = vpow2.f32 %v102_v40 }
  0x2b   :  { %291 = vpow2.f32 %v104_v41 }
  0x30   :  { %v290_v42 = vpop.eup %289 }
  0x31   :  { %v292_v43 = vpop.eup %291  ;;  %108 = vst [vmem:[#allocation1] ss:$2 sm:$0xff] %v290_v42 }
  0x32   :  { %112 = vst [vmem:[#allocation1 + $0x10] ss:$2 sm:$0xff] %v292_v43 }
  0x38   :  { %v109_v48 = vld.sshfl [vmem:[#allocation1] sm:$0xff pattern:$0x75316420]  ;;  %v110_v49 = vld.sshfl [vmem:[#allocation1 + $0x8] sm:$0xff pattern:$0x75316420] }
  0x39   :  { %v113_v50 = vld.sshfl [vmem:[#allocation1 + $0x10] sm:$0xff pattern:$0x75316420]  ;;  %v114_v51 = vld.sshfl [vmem:[#allocation1 + $0x18] sm:$0xff pattern:$0x75316420] }
  0x3a   :  { %v119_v52 = vsel %vm61_vm0, %v109_v48, 0.0  ;;  %v126_v53 = vsel %vm61_vm0, %v110_v49, 0.0  ;;  %v133_v54 = vsel %vm61_vm0, %v113_v50, 0.0  ;;  %v140_v55 = vsel %vm61_vm0, %v114_v51, 0.0  ;;  %165 = vst [vmem:[#allocation1] ss:$2 sm:$0xff] %v403_v0 }
  0x3b   :  { %v120_v56 = vrot.slane %v119_v52, 4  ;;  %v127_v57 = vrot.slane %v126_v53, 4  ;;  %v134_v58 = vrot.slane %v133_v54, 4  ;;  %v141_v59 = vrot.slane %v140_v55, 4  ;;  %169 = vst [vmem:[#allocation1 + $0x10] ss:$2 sm:$0xff] %v405_v1 }
  0x3d   :  { %v121_v2 = vadd.f32 %v120_v56, %v119_v52  ;;  %v128_v3 = vadd.f32 %v127_v57, %v126_v53  ;;  %v135_v4 = vadd.f32 %v134_v58, %v133_v54  ;;  %v142_v5 = vadd.f32 %v141_v59, %v140_v55 }
  0x3f   :  { %v122_v6 = vrot.slane %v121_v2, 2  ;;  %v129_v7 = vrot.slane %v128_v3, 2  ;;  %v136_v8 = vrot.slane %v135_v4, 2  ;;  %v143_v9 = vrot.slane %v142_v5, 2 }
  0x41   :  { %v123_v12 = vadd.f32 %v122_v6, %v121_v2  ;;  %v130_v13 = vadd.f32 %v129_v7, %v128_v3  ;;  %v137_v14 = vadd.f32 %v136_v8, %v135_v4  ;;  %v144_v15 = vadd.f32 %v143_v9, %v142_v5  ;;  %v166_v16 = vld.sshfl [vmem:[#allocation1] sm:$0xff pattern:$0x75316420]  ;;  %v167_v17 = vld.sshfl [vmem:[#allocation1 + $0x8] sm:$0xff pattern:$0x75316420] }
  0x42   :  { %v170_v18 = vld.sshfl [vmem:[#allocation1 + $0x10] sm:$0xff pattern:$0x75316420]  ;;  %v171_v19 = vld.sshfl [vmem:[#allocation1 + $0x18] sm:$0xff pattern:$0x75316420] }
  0x43   :  { %v124_v20 = vrot.slane %v123_v12, 1  ;;  %v131_v21 = vrot.slane %v130_v13, 1  ;;  %v138_v22 = vrot.slane %v137_v14, 1  ;;  %v145_v23 = vrot.slane %v144_v15, 1 }
  0x44   :  { %v176_v24 = vsel %vm435_vm1, %v166_v16, 0.0  ;;  %v177_v25 = vsel %vm439_vm2, %v167_v17, 0.0  ;;  %v178_v26 = vsel %vm443_vm3, %v170_v18, 0.0  ;;  %v179_v27 = vsel %vm447_vm4, %v171_v19, 0.0 }
  0x45   :  { %v125_v28 = vadd.f32 %v124_v20, %v123_v12  ;;  %v132_v29 = vadd.f32 %v131_v21, %v130_v13  ;;  %v139_v34 = vadd.f32 %v138_v22, %v137_v14  ;;  %v146_v35 = vadd.f32 %v145_v23, %v144_v15 }
  0x46   :  { %v180_v36 = vsel %vm61_vm0, %v176_v24, 0.0  ;;  %v187_v37 = vsel %vm61_vm0, %v177_v25, 0.0  ;;  %v194_v38 = vsel %vm61_vm0, %v178_v26, 0.0  ;;  %v201_v39 = vsel %vm61_vm0, %v179_v27, 0.0 }
  0x47   :  { %293 = vlog2.f32 %v125_v28  ;;  %v181_v40 = vrot.slane %v180_v36, 4  ;;  %v188_v41 = vrot.slane %v187_v37, 4  ;;  %v195_v42 = vrot.slane %v194_v38, 4 }
  0x48   :  { %295 = vlog2.f32 %v132_v29  ;;  %v202_v43 = vrot.slane %v201_v39, 4 }
  0x49   :  { %297 = vlog2.f32 %v139_v34  ;;  %v182_v44 = vadd.f32 %v181_v40, %v180_v36  ;;  %v189_v45 = vadd.f32 %v188_v41, %v187_v37  ;;  %v196_v46 = vadd.f32 %v195_v42, %v194_v38 }
  0x4a   :  { %299 = vlog2.f32 %v146_v35  ;;  %v203_v47 = vadd.f32 %v202_v43, %v201_v39 }
  0x4b   :  { %v183_v48 = vrot.slane %v182_v44, 2  ;;  %v190_v49 = vrot.slane %v189_v45, 2  ;;  %v197_v50 = vrot.slane %v196_v46, 2 }
  0x4c   :  { %v204_v51 = vrot.slane %v203_v47, 2 }
  0x4d   :  { %v294_v52 = vpop.eup %293  ;;  %v184_v53 = vadd.f32 %v183_v48, %v182_v44  ;;  %v191_v54 = vadd.f32 %v190_v49, %v189_v45  ;;  %v198_v55 = vadd.f32 %v197_v50, %v196_v46 }
  0x4e   :  { %v296_v56 = vpop.eup %295  ;;  %v205_v57 = vadd.f32 %v204_v51, %v203_v47  ;;  %v148_v63 = vmul.f32 0.6931472, %v294_v52 }
  0x4f   :  { %v298_v58 = vpop.eup %297  ;;  %v185_v59 = vrot.slane %v184_v53, 1  ;;  %v192_v60 = vrot.slane %v191_v54, 1  ;;  %v199_v61 = vrot.slane %v198_v55, 1  ;;  %v150_v2 = vmul.f32 0.6931472, %v296_v56 }
  0x50   :  { %v300_v62 = vpop.eup %299  ;;  %v206_v3 = vrot.slane %v205_v57, 1  ;;  %v152_v4 = vmul.f32 0.6931472, %v298_v58 }
  0x51   :  { %v186_v5 = vadd.f32 %v185_v59, %v184_v53  ;;  %v193_v6 = vadd.f32 %v192_v60, %v191_v54  ;;  %v200_v7 = vadd.f32 %v199_v61, %v198_v55  ;;  %v154_v8 = vmul.f32 0.6931472, %v300_v62 }
  0x52   :  { %v207_v9 = vadd.f32 %v206_v3, %v205_v57 }
  0x53   :  { %v208_v0 = vsub.f32 %v186_v5, %v413_v30  ;;  %v209_v10 = vsub.f32 %v193_v6, %v415_v31  ;;  %v210_v1 = vsub.f32 %v200_v7, %v417_v32 }
  0x54   :  { %v211_v11 = vsub.f32 %v207_v9, %v419_v33 }
  0x55   :  { %v212_v12 = vsub.f32 %v208_v0, %v148_v63  ;;  %v213_v13 = vsub.f32 %v209_v10, %v150_v2  ;;  %v214_v14 = vsub.f32 %v210_v1, %v152_v4 }
  0x56   :  { %v215_v15 = vsub.f32 %v211_v11, %v154_v8 }
  0x57   :  { %v216_v16 = vmul.f32 1.442695, %v212_v12  ;;  %v218_v17 = vmul.f32 1.442695, %v213_v13  ;;  %v220_v18 = vmul.f32 1.442695, %v214_v14 }
  0x58   :  { %v222_v19 = vmul.f32 1.442695, %v215_v15  ;;  %v232_v31 = vsub.f32 0.0, %v212_v12  ;;  %v233_v23 = vsub.f32 0.0, %v213_v13  ;;  %v234_v26 = vsub.f32 0.0, %v214_v14 }
  0x59   :  { %301 = vpow2.f32 %v216_v16  ;;  %v235_v29 = vsub.f32 0.0, %v215_v15 }
  0x5a   :  { %303 = vpow2.f32 %v218_v17 }
  0x5b   :  { %305 = vpow2.f32 %v220_v18 }
  0x5c   :  { %307 = vpow2.f32 %v222_v19 }
  0x5f   :  { %v302_v20 = vpop.eup %301 }
  0x60   :  { %v304_v30 = vpop.eup %303  ;;  %v224_v21 = vsub.f32 1.0, %v302_v20 }
  0x61   :  { %v306_v22 = vpop.eup %305  ;;  %v225_v32 = vsub.f32 1.0, %v304_v30 }
  0x62   :  { %v308_v33 = vpop.eup %307  ;;  %v226_v24 = vsub.f32 1.0, %v306_v22  ;;  %v228_v25 = vmul.f32 %v224_v21, %v224_v21 }
  0x63   :  { %v227_v27 = vsub.f32 1.0, %v308_v33  ;;  %v229_v28 = vmul.f32 %v225_v32, %v225_v32 }
  0x64   :  { %v230_v34 = vmul.f32 %v226_v24, %v226_v24  ;;  %v236_v35 = vmul.f32 %v232_v31, %v228_v25 }
  0x65   :  { %v231_v36 = vmul.f32 %v227_v27, %v227_v27  ;;  %v237_v37 = vmul.f32 %v233_v23, %v229_v28 }
  0x66   :  { %v238_v38 = vmul.f32 %v234_v26, %v230_v34  ;;  %v240_v39 = vmul.f32 0.25, %v236_v35 }
  0x67   :  { %v239_v40 = vmul.f32 %v235_v29, %v231_v36  ;;  %v241_v41 = vmul.f32 0.25, %v237_v37 }
  0x68   :  { %v242_v42 = vmul.f32 0.25, %v238_v38  ;;  %v245_v43 = vsel %vm244_vm5, %v240_v39, 0.0 }
  0x69   :  { %v243_v44 = vmul.f32 0.25, %v239_v40  ;;  %v246_v45 = vsel %vm244_vm5, %v241_v41, 0.0 }
  0x6a   :  { %v247_v46 = vadd.f32 %v246_v45, %v245_v43  ;;  %v248_v47 = vsel %vm244_vm5, %v242_v42, 0.0 }
  0x6b   :  { %v250_v48 = vsel %vm244_vm5, %v243_v44, 0.0 }
  0x6c   :  { %v249_v49 = vadd.f32 %v248_v47, %v247_v46 }
  0x6e   :  { %v251_v50 = vadd.f32 %v250_v48, %v249_v49 }
  0x70   :  { %252 = vadd.xlane.f32.xlu0 %v251_v50 }
  0xe3   :  { %v253_v51 = vpop.xlane.xlu0 %252 }
  0xe4   :  { %v254_v52 = vrot.slane %v253_v51, 4 }
  0xe6   :  { %v255_v53 = vadd.f32 %v254_v52, %v253_v51 }
  0xe8   :  { %v256_v54 = vrot.slane %v255_v53, 2 }
  0xea   :  { %v257_v55 = vadd.f32 %v256_v54, %v255_v53 }
  0xec   :  { %v258_v56 = vrot.slane %v257_v55, 1 }
  0xee   :  { %v259_v57 = vadd.f32 %v258_v56, %v257_v55 }
  0xf0   :  { %280 = vpush %v259_v57 }
 0x121   :  { %s281_s24 = spop %280 }
 0x122   :  { %262 = sst [smem:[#allocation7]] %s281_s24 }
 0x123   :  { %271 = dma.smem_to_hbm %s381_s25, 16, %s269_s23, [#allocation4]  }
 0x124   :  { %373 = dma.done.wait [#allocation4], 16  }
 0x125   :  { %374 = vsyncadd [#allocation4], 4294967280 }
 0x126   :  { %276 = sfence }
 0x127   :  { %277 = vsyncpa [#allocation3], 1 }
 0x128   :  { %278 = vsyncpa [#allocation6], 1 }
 0x129   :  { %279 = vsyncpa [#allocation4], 1 }

</bundles_post_ra>
